<compile_context>
chip_gen: v5e
topology: v5e:2x2
jax: 0.10.0
libtpu: 0.0.40
codegen_flags: <defaults>
</compile_context>

<pallas_src>
from functools import partial

import jax
import jax.numpy as jnp
from jax.experimental import pallas as pl
from jax.experimental.pallas import tpu as pltpu


def _round_up(x, m):
    return (x + m - 1) // m * m


def _cdiv(a, b):
    return -(-a // b)


def _make_fused_mlp_kernel(num_linear):
    """Kernel body: x_ref, (w_ref, b_ref) * num_linear, o_ref."""

    def kernel(x_ref, *refs):
        *param_refs, o_ref = refs
        h = x_ref[...]                              # f32 (tm, in_p)
        for i in range(num_linear):
            w = param_refs[2 * i][...]              # bf16 (k_in, k_out), VMEM-resident
            b = param_refs[2 * i + 1][...]          # f32  (1, k_out) -> broadcasts in add
            h = jnp.dot(h.astype(jnp.bfloat16), w,
                        preferred_element_type=jnp.float32) + b
            h = jnp.maximum(h, 0.0)                 # f32 tail (safe on v5e's VPU)
        o_ref[...] = h.astype(o_ref.dtype)

    return kernel


def init_fc_embedding_params(key, input_dim, output_dim=20, num_layers=2,
                             num_hiddens=50):
    """Deterministic init matching nn.Linear's uniform(-1/sqrt(fan_in), ...)."""
    dims = [input_dim] + [num_hiddens] * (num_layers - 1) + [output_dim]
    params = []
    for i in range(len(dims) - 1):
        key, kw, kb = jax.random.split(key, 3)
        bound = 1.0 / jnp.sqrt(dims[i])
        # stored as (in, out): equivalent to PyTorch weight (out, in) transposed
        w = jax.random.uniform(kw, (dims[i], dims[i + 1]), jnp.float32,
                               -bound, bound)
        b = jax.random.uniform(kb, (dims[i + 1],), jnp.float32, -bound, bound)
        params.append((w, b))
    return params


def prepare_fc_embedding_params(params):
    """Pad feature dims to 128-lane multiples and cast weights to bf16.

    Call ONCE at init and cache the result -- this is no longer on the
    per-call forward path.
    """
    padded = []
    for w, b in params:
        kin, kout = w.shape
        kin_p, kout_p = _round_up(kin, 128), _round_up(kout, 128)
        wp = jnp.zeros((kin_p, kout_p), jnp.float32).at[:kin, :kout].set(w)
        wp = wp.astype(jnp.bfloat16)                      # MXU-native operand
        bp = jnp.zeros((1, kout_p), jnp.float32).at[0, :kout].set(b)
        padded.append((wp, bp))
    return padded


def _choose_tiling(batch, max_batch_tile):
    """Return (padded_batch, tile_m, n_tiles) with minimal padding waste."""
    bp8 = _round_up(batch, 8)
    n_tiles = _cdiv(bp8, max_batch_tile)
    # Large batches: use >=2 tiles so 'parallel' shards across v7x's two TCs
    # (extra ~0.35us grid step is amortized; no-op on v5e/v6e).
    if bp8 >= 256:
        n_tiles = max(n_tiles, 2)
    tm = _round_up(_cdiv(bp8, n_tiles), 8)   # balanced tile -> waste < 8*n_tiles rows
    return tm * n_tiles, tm, n_tiles


@partial(jax.jit, static_argnames=("out_dim", "max_batch_tile"))
def fc_embedding_forward(x, padded_params, *, out_dim, max_batch_tile=512):
    """Fused MLP forward: one pallas_call for the entire network."""
    batch, input_dim = x.shape
    num_linear = len(padded_params)
    in_dim_p = padded_params[0][0].shape[0]
    out_dim_p = padded_params[-1][0].shape[1]

    bp, tm, n_tiles = _choose_tiling(batch, max_batch_tile)
    xp = jnp.zeros((bp, in_dim_p), jnp.float32).at[:batch, :input_dim].set(x)

    # x / out tile over the batch axis; weights & biases use constant index_maps
    # so they stay VMEM-resident across the whole grid (DMA'd once).
    in_specs = [pl.BlockSpec((tm, in_dim_p), lambda i: (i, 0))]
    flat_params = []
    for wp, bb in padded_params:
        in_specs.append(pl.BlockSpec(wp.shape, lambda i: (0, 0)))
        in_specs.append(pl.BlockSpec(bb.shape, lambda i: (0, 0)))
        flat_params.extend([wp, bb])
    out_specs = pl.BlockSpec((tm, out_dim_p), lambda i: (i, 0))

    # VMEM budget: (default double-buffered) resident params + double-buffered
    # x/out tiles + margin. Avoids the default scoped-VMEM cliffs.
    param_bytes = sum(wp.size * wp.dtype.itemsize + bb.size * bb.dtype.itemsize
                      for wp, bb in padded_params)
    act_bytes = 2 * tm * (in_dim_p + out_dim_p) * 4
    vmem_budget = int(2 * param_bytes + 2 * act_bytes + (4 << 20))
    vmem_budget = min(max(vmem_budget, 16 << 20), 100 << 20)

    # Advisory cost estimate for the XLA scheduler.
    flops = sum(2 * bp * wp.shape[0] * wp.shape[1] for wp, _ in padded_params)
    bytes_accessed = xp.size * 4 + bp * out_dim_p * 4 + param_bytes
    cost = pl.CostEstimate(flops=flops, transcendentals=0,
                           bytes_accessed=bytes_accessed)

    out_p = pl.pallas_call(
        _make_fused_mlp_kernel(num_linear),
        out_shape=jax.ShapeDtypeStruct((bp, out_dim_p), jnp.float32),
        grid=(n_tiles,),
        in_specs=in_specs,
        out_specs=out_specs,
        compiler_params=pltpu.CompilerParams(
            dimension_semantics=("parallel",),
            vmem_limit_bytes=vmem_budget,
        ),
        cost_estimate=cost,
    )(xp, *flat_params)

    # Padded rows/cols are sliced off (padded rows hold ReLU(b), harmless).
    return out_p[:batch, :out_dim]


if __name__ == "__main__":
    key = jax.random.PRNGKey(0)
    batch = 2
    input_dim = 16
    output_dim = 20
    num_layers = 3
    num_hiddens = 32

    kx, kp = jax.random.split(key)
    x = jax.random.normal(kx, (batch, input_dim), jnp.float32)
    params = init_fc_embedding_params(kp, input_dim, output_dim, num_layers,
                                      num_hiddens)
    # Pad / cast weights ONCE (cached, off the hot path).
    padded_params = prepare_fc_embedding_params(params)

    out = fc_embedding_forward(x, padded_params, out_dim=output_dim)
    out = jax.block_until_ready(out)

    # Reference in plain JAX emulating the kernel's math exactly:
    # bf16 operands into the matmul, f32 accumulation, f32 bias + ReLU.
    ref = x
    for w, b in params:
        ref = jnp.maximum(
            jnp.dot(ref.astype(jnp.bfloat16), w.astype(jnp.bfloat16),
                    preferred_element_type=jnp.float32) + b, 0.0)

    assert out.shape == (batch, output_dim)
    assert jnp.allclose(out, ref, atol=1e-2, rtol=1e-2), \
        float(jnp.max(jnp.abs(out - ref)))

    print("KERNEL_OK")
</pallas_src>

<mosaic_0001>
module attributes {stable_mosaic.version = 11 : i64} {
  func.func @kernel(%arg0: i32, %arg1: memref<8x128xf32, #tpu.memory_space<vmem>>, %arg2: memref<128x128xbf16, #tpu.memory_space<vmem>>, %arg3: memref<1x128xf32, #tpu.memory_space<vmem>>, %arg4: memref<128x128xbf16, #tpu.memory_space<vmem>>, %arg5: memref<1x128xf32, #tpu.memory_space<vmem>>, %arg6: memref<128x128xbf16, #tpu.memory_space<vmem>>, %arg7: memref<1x128xf32, #tpu.memory_space<vmem>>, %arg8: memref<8x128xf32, #tpu.memory_space<vmem>>) attributes {dimension_semantics = [#tpu.dimension_semantics<parallel>], iteration_bounds = array<i64: 1>, scalar_prefetch = 0 : i64, scratch_operands = 0 : i64, tpu.core_type = #tpu.core_type<tc>, window_params = [{transform_indices = @transform_0, window_bounds = array<i64: 8, 128>}, {pipeline_mode = #tpu.pipeline_mode<synchronous>, transform_indices = @transform_1, window_bounds = array<i64: 128, 128>}, {pipeline_mode = #tpu.pipeline_mode<synchronous>, transform_indices = @transform_2, window_bounds = array<i64: 1, 128>}, {pipeline_mode = #tpu.pipeline_mode<synchronous>, transform_indices = @transform_3, window_bounds = array<i64: 128, 128>}, {pipeline_mode = #tpu.pipeline_mode<synchronous>, transform_indices = @transform_4, window_bounds = array<i64: 1, 128>}, {pipeline_mode = #tpu.pipeline_mode<synchronous>, transform_indices = @transform_5, window_bounds = array<i64: 128, 128>}, {pipeline_mode = #tpu.pipeline_mode<synchronous>, transform_indices = @transform_6, window_bounds = array<i64: 1, 128>}, {transform_indices = @transform_7, window_bounds = array<i64: 8, 128>}]} {
    %c0 = arith.constant 0 : index
    %c0_0 = arith.constant 0 : index
    %0 = vector.load %arg1[%c0, %c0_0] : memref<8x128xf32, #tpu.memory_space<vmem>>, vector<8x128xf32>
    %c0_1 = arith.constant 0 : index
    %c0_2 = arith.constant 0 : index
    %1 = vector.load %arg2[%c0_1, %c0_2] : memref<128x128xbf16, #tpu.memory_space<vmem>>, vector<128x128xbf16>
    %c0_3 = arith.constant 0 : index
    %c0_4 = arith.constant 0 : index
    %2 = vector.load %arg3[%c0_3, %c0_4] : memref<1x128xf32, #tpu.memory_space<vmem>>, vector<1x128xf32>
    %3 = arith.truncf %0 : vector<8x128xf32> to vector<8x128xbf16>
    %cst = arith.constant dense<0.000000e+00> : vector<8x128xf32>
    %4 = tpu.matmul %3, %1, %cst {dimension_numbers = #tpu.dot_dimension_numbers<[1], [0], [0], [1], [0, 0, 1, 1], [], []>} : vector<8x128xbf16>, vector<128x128xbf16>, vector<8x128xf32> -> vector<8x128xf32>
    %5 = vector.broadcast %2 : vector<1x128xf32> to vector<8x128xf32>
    %6 = arith.addf %4, %5 : vector<8x128xf32>
    %cst_5 = arith.constant 0.000000e+00 : f32
    %7 = vector.broadcast %cst_5 : f32 to vector<8x128xf32>
    %8 = arith.maximumf %6, %7 : vector<8x128xf32>
    %c0_6 = arith.constant 0 : index
    %c0_7 = arith.constant 0 : index
    %9 = vector.load %arg4[%c0_6, %c0_7] : memref<128x128xbf16, #tpu.memory_space<vmem>>, vector<128x128xbf16>
    %c0_8 = arith.constant 0 : index
    %c0_9 = arith.constant 0 : index
    %10 = vector.load %arg5[%c0_8, %c0_9] : memref<1x128xf32, #tpu.memory_space<vmem>>, vector<1x128xf32>
    %11 = arith.truncf %8 : vector<8x128xf32> to vector<8x128xbf16>
    %cst_10 = arith.constant dense<0.000000e+00> : vector<8x128xf32>
    %12 = tpu.matmul %11, %9, %cst_10 {dimension_numbers = #tpu.dot_dimension_numbers<[1], [0], [0], [1], [0, 0, 1, 1], [], []>} : vector<8x128xbf16>, vector<128x128xbf16>, vector<8x128xf32> -> vector<8x128xf32>
    %13 = vector.broadcast %10 : vector<1x128xf32> to vector<8x128xf32>
    %14 = arith.addf %12, %13 : vector<8x128xf32>
    %cst_11 = arith.constant 0.000000e+00 : f32
    %15 = vector.broadcast %cst_11 : f32 to vector<8x128xf32>
    %16 = arith.maximumf %14, %15 : vector<8x128xf32>
    %c0_12 = arith.constant 0 : index
    %c0_13 = arith.constant 0 : index
    %17 = vector.load %arg6[%c0_12, %c0_13] : memref<128x128xbf16, #tpu.memory_space<vmem>>, vector<128x128xbf16>
    %c0_14 = arith.constant 0 : index
    %c0_15 = arith.constant 0 : index
    %18 = vector.load %arg7[%c0_14, %c0_15] : memref<1x128xf32, #tpu.memory_space<vmem>>, vector<1x128xf32>
    %19 = arith.truncf %16 : vector<8x128xf32> to vector<8x128xbf16>
    %cst_16 = arith.constant dense<0.000000e+00> : vector<8x128xf32>
    %20 = tpu.matmul %19, %17, %cst_16 {dimension_numbers = #tpu.dot_dimension_numbers<[1], [0], [0], [1], [0, 0, 1, 1], [], []>} : vector<8x128xbf16>, vector<128x128xbf16>, vector<8x128xf32> -> vector<8x128xf32>
    %21 = vector.broadcast %18 : vector<1x128xf32> to vector<8x128xf32>
    %22 = arith.addf %20, %21 : vector<8x128xf32>
    %cst_17 = arith.constant 0.000000e+00 : f32
    %23 = vector.broadcast %cst_17 : f32 to vector<8x128xf32>
    %24 = arith.maximumf %22, %23 : vector<8x128xf32>
    %c0_18 = arith.constant 0 : index
    %c0_19 = arith.constant 0 : index
    %25 = vector.load %arg8[%c0_18, %c0_19] : memref<8x128xf32, #tpu.memory_space<vmem>>, vector<8x128xf32>
    tpu.vector_store %arg8[%c0_18, %c0_19], %24 {strides = array<i32>} : memref<8x128xf32, #tpu.memory_space<vmem>>, vector<8x128xf32>,
    return
  }
  func.func @transform_0(%arg0: i32) -> (i32, i32) {
    %c0_i32 = arith.constant 0 : i32
    %c0_i32_0 = arith.constant 0 : i32
    return %arg0, %c0_i32 : i32, i32
  }
  func.func @transform_1(%arg0: i32) -> (i32, i32) {
    %c0_i32 = arith.constant 0 : i32
    %c0_i32_0 = arith.constant 0 : i32
    %c0_i32_1 = arith.constant 0 : i32
    return %c0_i32, %c0_i32_0 : i32, i32
  }
  func.func @transform_2(%arg0: i32) -> (i32, i32) {
    %c0_i32 = arith.constant 0 : i32
    %c0_i32_0 = arith.constant 0 : i32
    %c0_i32_1 = arith.constant 0 : i32
    return %c0_i32, %c0_i32_0 : i32, i32
  }
  func.func @transform_3(%arg0: i32) -> (i32, i32) {
    %c0_i32 = arith.constant 0 : i32
    %c0_i32_0 = arith.constant 0 : i32
    %c0_i32_1 = arith.constant 0 : i32
    return %c0_i32, %c0_i32_0 : i32, i32
  }
  func.func @transform_4(%arg0: i32) -> (i32, i32) {
    %c0_i32 = arith.constant 0 : i32
    %c0_i32_0 = arith.constant 0 : i32
    %c0_i32_1 = arith.constant 0 : i32
    return %c0_i32, %c0_i32_0 : i32, i32
  }
  func.func @transform_5(%arg0: i32) -> (i32, i32) {
    %c0_i32 = arith.constant 0 : i32
    %c0_i32_0 = arith.constant 0 : i32
    %c0_i32_1 = arith.constant 0 : i32
    return %c0_i32, %c0_i32_0 : i32, i32
  }
  func.func @transform_6(%arg0: i32) -> (i32, i32) {
    %c0_i32 = arith.constant 0 : i32
    %c0_i32_0 = arith.constant 0 : i32
    %c0_i32_1 = arith.constant 0 : i32
    return %c0_i32, %c0_i32_0 : i32, i32
  }
  func.func @transform_7(%arg0: i32) -> (i32, i32) {
    %c0_i32 = arith.constant 0 : i32
    %c0_i32_0 = arith.constant 0 : i32
    return %arg0, %c0_i32 : i32, i32
  }
}

</mosaic_0001>

<bundles_post_ra>
// kernel: fc_embedding_forward.1
= control target key start
LH: loop header
LB: loop body
LE: loop exit
PB: predicated region body
PF: predicated region fallthrough
CT: control target
= control target key end

     0   :  { %12 = vsyncpa [#allocation3], 0  ;;  %s603_s0 = inlined_call_operand.vmem [shape: f32[8,128], index: 0, kind: input, shape index: {}]   ;;  %s604_s1 = inlined_call_operand.hbm [shape: bf16[128,128], index: 1, kind: input, shape index: {}]   ;;  %s605_s2 = inlined_call_operand.vmem [shape: f32[1,128], index: 2, kind: input, shape index: {}]   ;;  %s606_s3 = inlined_call_operand.hbm [shape: bf16[128,128], index: 3, kind: input, shape index: {}]   ;;  %s607_s4 = inlined_call_operand.vmem [shape: f32[1,128], index: 4, kind: input, shape index: {}]   ;;  %s608_s5 = inlined_call_operand.hbm [shape: bf16[128,128], index: 5, kind: input, shape index: {}]   ;;  %s609_s6 = inlined_call_operand.vmem [shape: f32[1,128], index: 6, kind: input, shape index: {}]   ;;  %s610_s7 = inlined_call_operand.vmem [shape: f32[8,128], index: 7, kind: output, shape index: {}]  }
   0x1   :  { %13 = vsyncpa [#allocation5], 0  ;;  %s35_s26 = sshll.u32 %s606_s3, 4  ;;  %s534_s27 = smov [#allocation4]   ;;  %s36_s26 = int_to_ptr.hbm [resolvable:$true] %s35_s26 }
   0x2   :  { %s37_s28 = sshll.u32 %s534_s27, 4  ;;  %s20_s8 = sshll.u32 %s604_s1, 4  ;;  %s38_s28 = int_to_ptr.vmem [resolvable:$true] %s37_s28  ;;  %s21_s8 = int_to_ptr.hbm [resolvable:$true] %s20_s8 }
   0x3   :  { %s535_s9 = smov 64   ;;  %s536_s10 = smov 4  }
   0x4   :  { %43 = dma.hbm_to_vmem [thread:$0]  %s36_s26, 1024, %s38_s28, [#allocation5], %s535_s9, %s535_s9, %s536_s10  }
   0x5   :  { %s537_s11 = smov [#allocation2]   ;;  %s50_s15 = sshll.u32 %s608_s5, 4  ;;  %s51_s15 = int_to_ptr.hbm [resolvable:$true] %s50_s15 }
   0x6   :  { %s22_s12 = sshll.u32 %s537_s11, 4  ;;  %s538_s3 = smov [#allocation6]   ;;  %s23_s12 = int_to_ptr.vmem [resolvable:$true] %s22_s12 }
   0x7   :  { %28 = dma.hbm_to_vmem [thread:$0]  %s21_s8, 1024, %s23_s12, [#allocation3], %s535_s9, %s535_s9, %s536_s10  }
   0x8   :  { %s52_s16 = sshll.u32 %s538_s3, 4  ;;  %s53_s16 = int_to_ptr.vmem [resolvable:$true] %s52_s16 }
   0x9   :  { %58 = dma.hbm_to_vmem [thread:$0]  %s51_s15, 1024, %s53_s16, [#allocation5], %s535_s9, %s535_s9, %s536_s10  }
   0xa   :  { %530 = dma.done.wait [#allocation3], 1024  }
   0xb   :  { %531 = vsyncadd [#allocation3], 4294966272 }
   0xc   :  { %532 = dma.done.wait [#allocation5], 2048  }
   0xd   :  { %533 = vsyncadd [#allocation5], 4294965248  ;;  %v433_v0 = vld [vmem:[#allocation2 + $0x38] sm:$0xff]  ;;  %v432_v1 = vld [vmem:[#allocation2 + $0x30] sm:$0xff] }
   0xe   :  { %143 = vmatpush.bf16.msra.mxu0 %v433_v0  ;;  %v441_v2 = vld [vmem:[#allocation4 + $0x38] sm:$0xff]  ;;  %v440_v3 = vld [vmem:[#allocation4 + $0x30] sm:$0xff]  ;;  %v431_v4 = vld [vmem:[#allocation2 + $0x28] sm:$0xff] }
   0xf   :  { %226 = vmatpush.bf16.msra.mxu1 %v441_v2  ;;  %v439_v5 = vld [vmem:[#allocation4 + $0x28] sm:$0xff]  ;;  %v430_v6 = vld [vmem:[#allocation2 + $0x20] sm:$0xff]  ;;  %v429_v8 = vld [vmem:[#allocation2 + $0x18] sm:$0xff] }
  0x10   :  { %v438_v7 = vld [vmem:[#allocation4 + $0x20] sm:$0xff]  ;;  %v437_v9 = vld [vmem:[#allocation4 + $0x18] sm:$0xff]  ;;  %v428_v10 = vld [vmem:[#allocation2 + $0x10] sm:$0xff] }
  0x11   :  { %v436_v11 = vld [vmem:[#allocation4 + $0x10] sm:$0xff]  ;;  %v427_v12 = vld [vmem:[#allocation2 + $0x8] sm:$0xff]  ;;  %v426_v13 = vld [vmem:[#allocation2] sm:$0xff] }
  0x12   :  { %144 = vmatpush.bf16.msra.mxu0 %v432_v1  ;;  %v73_v14 = vld [vmem:[%s603_s0] sm:$0xff]  ;;  %v435_v16 = vld [vmem:[#allocation4 + $0x8] sm:$0xff]  ;;  %v449_v18 = vld [vmem:[#allocation6 + $0x38] sm:$0xff] }
  0x13   :  { %227 = vmatpush.bf16.msra.mxu1 %v440_v3  ;;  %v91_v15 = vpack.c.bf16 %v73_v14, %v73_v14  ;;  %v434_v17 = vld [vmem:[#allocation4] sm:$0xff]  ;;  %309 = vmatpush.bf16.msra.mxu2 %v449_v18  ;;  %v448_v19 = vld [vmem:[#allocation6 + $0x30] sm:$0xff]  ;;  %v447_v20 = vld [vmem:[#allocation6 + $0x28] sm:$0xff] }
  0x14   :  { %v446_v21 = vld [vmem:[#allocation6 + $0x20] sm:$0xff]  ;;  %v445_v22 = vld [vmem:[#allocation6 + $0x18] sm:$0xff]  ;;  %v444_v23 = vld [vmem:[#allocation6 + $0x10] sm:$0xff] }
  0x15   :  { %v455_v24 = vld [vmem:[%s605_s2] ss:$0 sm:$0xff]  ;;  %v443_v30 = vld [vmem:[#allocation6 + $0x8] sm:$0xff] }
  0x16   :  { %145 = vmatpush.bf16.msra.mxu0 %v431_v4  ;;  %v442_v31 = vld [vmem:[#allocation6] sm:$0xff] }
  0x17   :  { %228 = vmatpush.bf16.msra.mxu1 %v439_v5  ;;  %310 = vmatpush.bf16.msra.mxu2 %v448_v19  ;;  %v456_v32 = vld [vmem:[%s607_s4] ss:$0 sm:$0xff] }
  0x18   :  { %v457_v38 = vld [vmem:[%s609_s6] ss:$0 sm:$0xff] }
  0x1a   :  { %146 = vmatpush.bf16.msra.mxu0 %v430_v6 }
  0x1b   :  { %229 = vmatpush.bf16.msra.mxu1 %v438_v7  ;;  %311 = vmatpush.bf16.msra.mxu2 %v447_v20 }
  0x1e   :  { %147 = vmatpush.bf16.msra.mxu0 %v429_v8 }
  0x1f   :  { %230 = vmatpush.bf16.msra.mxu1 %v437_v9  ;;  %312 = vmatpush.bf16.msra.mxu2 %v446_v21 }
  0x22   :  { %148 = vmatpush.bf16.msra.mxu0 %v428_v10 }
  0x23   :  { %231 = vmatpush.bf16.msra.mxu1 %v436_v11  ;;  %313 = vmatpush.bf16.msra.mxu2 %v445_v22 }
  0x26   :  { %149 = vmatpush.bf16.msra.mxu0 %v427_v12 }
  0x27   :  { %232 = vmatpush.bf16.msra.mxu1 %v435_v16  ;;  %314 = vmatpush.bf16.msra.mxu2 %v444_v23 }
  0x2a   :  { %150 = vmatpush.bf16.msra.mxu0 %v426_v13 }
  0x2b   :  { %233 = vmatpush.bf16.msra.mxu1 %v434_v17  ;;  %315 = vmatpush.bf16.msra.mxu2 %v443_v30 }
  0x2d   :  { %151 = vmatmul.bf16.vlgmr.msra.gmra.mxu0 %v91_v15 }
  0x2f   :  { %316 = vmatpush.bf16.msra.mxu2 %v442_v31 }
  0xaa   :  { %v152_v25 = vpop.f32.mrf.mxu0 }
  0xab   :  { %v153_v26 = vadd.f32 %v455_v24, %v152_v25 }
  0xad   :  { %v156_v27 = vmax.f32 %v153_v26, 0.0 }
  0xaf   :  { %v174_v28 = vpack.c.bf16 %v156_v27, %v156_v27 }
  0xb1   :  { %234 = vmatmul.bf16.vlgmr.msra.gmra.mxu1 %v174_v28 }
  0xb2   :  { %v154_v29 = vpop.f32.mrf.mxu0 }
 0x12e   :  { %v235_v33 = vpop.f32.mrf.mxu1 }
 0x12f   :  { %v236_v34 = vadd.f32 %v456_v32, %v235_v33 }
 0x131   :  { %v239_v35 = vmax.f32 %v236_v34, 0.0 }
 0x133   :  { %v257_v36 = vpack.c.bf16 %v239_v35, %v239_v35 }
 0x135   :  { %317 = vmatmul.bf16.vlgmr.msra.gmra.mxu2 %v257_v36 }
 0x136   :  { %v237_v37 = vpop.f32.mrf.mxu1 }
 0x1b8   :  { %v318_v39 = vpop.f32.mrf.mxu2 }
 0x1b9   :  { %v319_v40 = vadd.f32 %v457_v38, %v318_v39 }
 0x1bb   :  { %v322_v41 = vmax.f32 %v319_v40, 0.0 }
 0x1bd   :  { %323 = vst [vmem:[%s610_s7] sm:$0xff] %v322_v41 }
 0x1c0   :  { %v320_v42 = vpop.f32.mrf.mxu2 }
 0x1c1   :  { %328 = vsyncpa [#allocation3], 1 }
 0x1c2   :  { %329 = vsyncpa [#allocation5], 1 }

</bundles_post_ra>
